<compile_context>
chip_gen: v6e
topology: v6e:2x2x1
jax: 0.10.0
libtpu: 0.0.40
codegen_flags: <defaults>
</compile_context>

<pallas_src>
import jax
import jax.numpy as jnp
from jax.experimental import pallas as pl
from jax.experimental.pallas import tpu as pltpu


def _round_up(x, m):
    return ((x + m - 1) // m) * m


def _padded_tile_bytes(rows, cols, itemsize=4):
    """VMEM footprint of one (rows, cols) f32 tile after (8, 128) padding."""
    return _round_up(max(rows, 1), 8) * _round_up(max(cols, 1), 128) * itemsize


def pose_discriminator_kernel(xT_ref, w1_ref, b1_ref, w2_ref, b2_ref, o_ref):
    # Batch-on-lanes: x tile is (D, TB); weights are resident full blocks.
    xT = xT_ref[...].astype(jnp.float32)                     # mirrors torch .float()
    # Linear 1 on the MXU: (H, D) @ (D, TB) + (H, 1) -> (H, TB)
    h = jnp.dot(w1_ref[...], xT, preferred_element_type=jnp.float32) + b1_ref[...]
    # LeakyReLU(negative_slope=0.2): vmul + vmax
    h = jnp.maximum(h, 0.2 * h)
    # Linear 2 on the MXU: (1, H) @ (H, TB) + scalar -> (1, TB), lane-dense output
    o = jnp.dot(w2_ref[...], h, preferred_element_type=jnp.float32) + b2_ref[0]
    o_ref[...] = o


def pose_discriminator_forward(x, w1, b1, w2, b2, *, block_b=4096):
    """Fused Linear -> LeakyReLU(0.2) -> Linear, batch-on-lanes layout.

    Args:
      x:  (B, input_size) activations.
      w1: (hidden_size, input_size) torch-layout weight of the first Linear.
      b1: (hidden_size,) bias of the first Linear.
      w2: (1, hidden_size) torch-layout weight of the second Linear.
      b2: (1,) bias of the second Linear.

    Returns (h, None) with h = output.squeeze(), matching the torch module.
    """
    B, D = x.shape
    H = w1.shape[0]

    # One-time wrapper-side transpose so the kernel lane axis carries the batch.
    xT = jnp.transpose(x)                               # (D, B)
    w1f = w1.astype(jnp.float32)                        # (H, D)
    b1c = b1.reshape(H, 1).astype(jnp.float32)          # (H, 1) -> lane-broadcast
    w2r = w2.reshape(1, H).astype(jnp.float32)          # (1, H)
    b2s = b2.reshape(1).astype(jnp.float32)             # scalar -> SMEM

    # Batch tile: lane-dense (multiple of 128). For B <= 128 use one full-extent
    # block; otherwise aim for >= 2 grid steps (v7x has 2 TCs) and cap at block_b.
    block_b = max(128, _round_up(block_b, 128))
    if B <= 128:
        TB = B
    else:
        TB = max(128, min(block_b, _round_up((B + 1) // 2, 128)))
    grid = (pl.cdiv(B, TB),)   # edge block is bounds-clipped; no wrapper-side pad

    # Padding-aware VMEM budget: double-buffered streaming tiles + resident weights.
    est = (
        2 * (_padded_tile_bytes(D, TB) + _padded_tile_bytes(1, TB))
        + 2 * (_padded_tile_bytes(H, D) + _padded_tile_bytes(H, 1)
               + _padded_tile_bytes(1, H))
    )
    vmem_limit = int(min(max(2 * est, 4 << 20), 32 << 20))

    out = pl.pallas_call(
        pose_discriminator_kernel,
        out_shape=jax.ShapeDtypeStruct((1, B), jnp.float32),
        grid=grid,
        in_specs=[
            pl.BlockSpec((D, TB), lambda i: (0, i)),             # x tile (batch on lanes)
            pl.BlockSpec((H, D), lambda i: (0, 0)),              # w1 resident
            pl.BlockSpec((H, 1), lambda i: (0, 0)),              # b1 resident
            pl.BlockSpec((1, H), lambda i: (0, 0)),              # w2 resident
            pl.BlockSpec(memory_space=pltpu.MemorySpace.SMEM),   # b2 scalar
        ],
        out_specs=pl.BlockSpec((1, TB), lambda i: (0, i)),       # lane-dense output
        compiler_params=pltpu.CompilerParams(
            dimension_semantics=("parallel",),   # batch tiles shard across TCs (v7x)
            vmem_limit_bytes=vmem_limit,
        ),
    )(xT, w1f, b1c, w2r, b2s)

    # torch .squeeze(): (1, B) -> (B,)  (or 0-d scalar if B == 1, torch parity).
    h = jnp.squeeze(out)
    return h, None


def init_params(key, input_size, hidden_size):
    """Deterministic init mimicking nn.Linear defaults (uniform +-1/sqrt(fan_in)).

    Weights use torch layout: (out_features, in_features).
    """
    k1, k2, k3, k4 = jax.random.split(key, 4)
    lim1 = 1.0 / (input_size ** 0.5)
    lim2 = 1.0 / (hidden_size ** 0.5)
    w1 = jax.random.uniform(k1, (hidden_size, input_size), jnp.float32, -lim1, lim1)
    b1 = jax.random.uniform(k2, (hidden_size,), jnp.float32, -lim1, lim1)
    w2 = jax.random.uniform(k3, (1, hidden_size), jnp.float32, -lim2, lim2)
    b2 = jax.random.uniform(k4, (1,), jnp.float32, -lim2, lim2)
    return w1, b1, w2, b2


if __name__ == "__main__":
    input_size = 16
    hidden_size = 32

    key = jax.random.PRNGKey(0)
    kx, kp, kx2 = jax.random.split(key, 3)
    w1, b1, w2, b2 = init_params(kp, input_size, hidden_size)

    def ref_fn(xv):
        z = xv @ w1.T + b1
        z = jnp.where(z > 0, z, 0.2 * z)
        return jnp.squeeze(z @ w2.T + b2)

    # Small batch: single full-extent block, matches the module's typical usage.
    x_small = jax.random.normal(kx, (8, input_size), dtype=jnp.float32)
    h_small, none_out = pose_discriminator_forward(x_small, w1, b1, w2, b2)
    h_small = jax.block_until_ready(h_small)
    assert h_small.shape == (8,)
    assert none_out is None
    assert jnp.allclose(h_small, ref_fn(x_small), atol=1e-5, rtol=1e-5)

    # Larger, non-multiple-of-tile batch: exercises the lane-dense batch grid,
    # resident weights, and edge-block clipping (no wrapper-side pad).
    x_big = jax.random.normal(kx2, (1000, input_size), dtype=jnp.float32)
    h_big, _ = pose_discriminator_forward(x_big, w1, b1, w2, b2)
    h_big = jax.block_until_ready(h_big)
    assert h_big.shape == (1000,)
    assert jnp.allclose(h_big, ref_fn(x_big), atol=1e-4, rtol=1e-4)

    print("KERNEL_OK")
</pallas_src>

<mosaic_0001>
module attributes {stable_mosaic.version = 11 : i64} {
  func.func @pose_discriminator_kernel(%arg0: i32, %arg1: memref<16x8xf32, #tpu.memory_space<vmem>>, %arg2: memref<32x16xf32, #tpu.memory_space<vmem>>, %arg3: memref<32x1xf32, #tpu.memory_space<vmem>>, %arg4: memref<1x32xf32, #tpu.memory_space<vmem>>, %arg5: memref<1xf32, #tpu.memory_space<smem>>, %arg6: memref<1x8xf32, #tpu.memory_space<vmem>>) attributes {dimension_semantics = [#tpu.dimension_semantics<parallel>], iteration_bounds = array<i64: 1>, scalar_prefetch = 0 : i64, scratch_operands = 0 : i64, tpu.core_type = #tpu.core_type<tc>, window_params = [{transform_indices = @transform_0, window_bounds = array<i64: 16, 8>}, {pipeline_mode = #tpu.pipeline_mode<synchronous>, transform_indices = @transform_1, window_bounds = array<i64: 32, 16>}, {pipeline_mode = #tpu.pipeline_mode<synchronous>, transform_indices = @transform_2, window_bounds = array<i64: 32, 1>}, {pipeline_mode = #tpu.pipeline_mode<synchronous>, transform_indices = @transform_3, window_bounds = array<i64: 1, 32>}, {transform_indices = @transform_4, window_bounds = array<i64: 1>}, {transform_indices = @transform_5, window_bounds = array<i64: 1, 8>}]} {
    %c0 = arith.constant 0 : index
    %c0_0 = arith.constant 0 : index
    %0 = vector.load %arg1[%c0, %c0_0] : memref<16x8xf32, #tpu.memory_space<vmem>>, vector<16x8xf32>
    %c0_1 = arith.constant 0 : index
    %c0_2 = arith.constant 0 : index
    %1 = vector.load %arg2[%c0_1, %c0_2] : memref<32x16xf32, #tpu.memory_space<vmem>>, vector<32x16xf32>
    %cst = arith.constant dense<0.000000e+00> : vector<32x8xf32>
    %2 = tpu.matmul %1, %0, %cst {dimension_numbers = #tpu.dot_dimension_numbers<[1], [0], [0], [1], [0, 0, 1, 1], [], []>} : vector<32x16xf32>, vector<16x8xf32>, vector<32x8xf32> -> vector<32x8xf32>
    %c0_3 = arith.constant 0 : index
    %c0_4 = arith.constant 0 : index
    %3 = vector.load %arg3[%c0_3, %c0_4] : memref<32x1xf32, #tpu.memory_space<vmem>>, vector<32x1xf32>
    %4 = vector.broadcast %3 : vector<32x1xf32> to vector<32x8xf32>
    %5 = arith.addf %2, %4 : vector<32x8xf32>
    %cst_5 = arith.constant 2.000000e-01 : f32
    %6 = vector.broadcast %cst_5 : f32 to vector<32x8xf32>
    %7 = arith.mulf %6, %5 : vector<32x8xf32>
    %8 = arith.maximumf %5, %7 : vector<32x8xf32>
    %c0_6 = arith.constant 0 : index
    %c0_7 = arith.constant 0 : index
    %9 = vector.load %arg4[%c0_6, %c0_7] : memref<1x32xf32, #tpu.memory_space<vmem>>, vector<1x32xf32>
    %cst_8 = arith.constant dense<0.000000e+00> : vector<1x8xf32>
    %10 = tpu.matmul %9, %8, %cst_8 {dimension_numbers = #tpu.dot_dimension_numbers<[1], [0], [0], [1], [0, 0, 1, 1], [], []>} : vector<1x32xf32>, vector<32x8xf32>, vector<1x8xf32> -> vector<1x8xf32>
    %c0_9 = arith.constant 0 : index
    %11 = memref.load %arg5[%c0_9] : memref<1xf32, #tpu.memory_space<smem>>
    %12 = vector.broadcast %11 : f32 to vector<1x8xf32>
    %13 = arith.addf %10, %12 : vector<1x8xf32>
    %c0_10 = arith.constant 0 : index
    %c0_11 = arith.constant 0 : index
    %14 = vector.load %arg6[%c0_10, %c0_11] : memref<1x8xf32, #tpu.memory_space<vmem>>, vector<1x8xf32>
    tpu.vector_store %arg6[%c0_10, %c0_11], %13 {strides = array<i32>} : memref<1x8xf32, #tpu.memory_space<vmem>>, vector<1x8xf32>,
    return
  }
  func.func @transform_0(%arg0: i32) -> (i32, i32) {
    %c0_i32 = arith.constant 0 : i32
    %c0_i32_0 = arith.constant 0 : i32
    return %c0_i32, %arg0 : i32, i32
  }
  func.func @transform_1(%arg0: i32) -> (i32, i32) {
    %c0_i32 = arith.constant 0 : i32
    %c0_i32_0 = arith.constant 0 : i32
    %c0_i32_1 = arith.constant 0 : i32
    return %c0_i32, %c0_i32_0 : i32, i32
  }
  func.func @transform_2(%arg0: i32) -> (i32, i32) {
    %c0_i32 = arith.constant 0 : i32
    %c0_i32_0 = arith.constant 0 : i32
    %c0_i32_1 = arith.constant 0 : i32
    return %c0_i32, %c0_i32_0 : i32, i32
  }
  func.func @transform_3(%arg0: i32) -> (i32, i32) {
    %c0_i32 = arith.constant 0 : i32
    %c0_i32_0 = arith.constant 0 : i32
    %c0_i32_1 = arith.constant 0 : i32
    return %c0_i32, %c0_i32_0 : i32, i32
  }
  func.func @transform_4(%arg0: i32) -> i32 {
    %c0_i32 = arith.constant 0 : i32
    %c0_i32_0 = arith.constant 0 : i32
    return %c0_i32 : i32
  }
  func.func @transform_5(%arg0: i32) -> (i32, i32) {
    %c0_i32 = arith.constant 0 : i32
    %c0_i32_0 = arith.constant 0 : i32
    return %c0_i32, %arg0 : i32, i32
  }
}

</mosaic_0001>

<bundles_post_ra>
// kernel: tpu_custom_call.1
= control target key start
LH: loop header
LB: loop body
LE: loop exit
PB: predicated region body
PF: predicated region fallthrough
CT: control target
= control target key end

     0   :  { %vm52_vm0 = vcmask 130048   ;;  %v316_v4 = vmov 0   ;;  %s393_s0 = inlined_call_operand.vmem [shape: f32[16,8], index: 0, kind: input, shape index: {}]   ;;  %s394_s1 = inlined_call_operand.vmem [shape: f32[32,16], index: 1, kind: input, shape index: {}]   ;;  %s395_s2 = inlined_call_operand.vmem [shape: f32[32,1], index: 2, kind: input, shape index: {}]   ;;  %s396_s3 = inlined_call_operand.vmem [shape: f32[1,32], index: 3, kind: input, shape index: {}]   ;;  %s397_s4 = inlined_call_operand.<no memory space> [shape: f32[1], index: 4, kind: input, shape index: {}]   ;;  %s398_s5 = inlined_call_operand.hbm [shape: f32[1,8], index: 5, kind: output, shape index: {}]  }
   0x1   :  { %v23_v0 = vld [vmem:[%s393_s0 + $0x8] sm:$0xff]  ;;  %v22_v1 = vld [vmem:[%s393_s0] sm:$0xff]  ;;  %293 = vset.pattern.permute.xlu1 %v316_v4  ;;  %v31_v5 = vld [vmem:[%s395_s2 + $0x18] sm:$0xff]  ;;  %292 = vset.pattern.permute.xlu0 %v316_v4 }
   0x2   :  { %v24_v2 = vld [vmem:[%s394_s1] sm:$0xff]  ;;  %267 = vmatprep.subr.mxu0 %v23_v0  ;;  %v25_v3 = vld [vmem:[%s394_s1 + $0x8] sm:$0xff]  ;;  %v26_v7 = vld [vmem:[%s394_s1 + $0x10] sm:$0xff] }
   0x3   :  { %271 = vmatprep.mubr.msk.f32.mxu0 %vm52_vm0, %v24_v2  ;;  %268 = vmatpush3.msra.mxu0 %v23_v0  ;;  %v29_v6 = vld [vmem:[%s395_s2 + $0x8] sm:$0xff] }
   0x4   :  { %269 = vmatprep.subr.mxu0 %v22_v1 }
   0x5   :  { %11 = vsyncpa [#allocation4], 0  ;;  %270 = vmatpush3.msra.mxu0 %v22_v1  ;;  %49 = vperm.xlu0 %292, %v31_v5   ;;  %v30_v8 = vld [vmem:[%s395_s2 + $0x10] sm:$0xff]  ;;  %v27_v9 = vld [vmem:[%s394_s1 + $0x18] sm:$0xff]  ;;  %v317_v11 = vmov 0.0   ;;  %vm318_vm1 = vmmov 0   ;;  %v160_v33 = vstv %s397_s4 }
   0x6   :  { %272 = vmatmul.mubr.msk.f32.vlgmr.msra.gmra.mxu0 %vm52_vm0, %v25_v3  ;;  %39 = vperm.xlu1 %293, %v29_v6   ;;  %v28_v10 = vld [vmem:[%s395_s2] sm:$0xff]  ;;  %vm161_vm2 = vcmask 261120   ;;  %s319_s14 = smov [#allocation3]   ;;  %vm235_vm3 = vcmask 57344  }
   0x7   :  { %274 = vmatprep.mubr.msk.f32.mxu0 %vm52_vm0, %v26_v7  ;;  %277 = vmatprep.subr.mxu1 %v317_v11  ;;  %v158_v32 = vld [vmem:[%s396_s3] sm:$0x1]  ;;  %s243_s15 = sshll.u32 %s319_s14, 4  ;;  %s244_s15 = int_to_ptr.vmem [resolvable:$true] %s243_s15 }
   0x8   :  { %285 = vmatprep.mubr.msk.f32.mxu1 %vm318_vm1, %v317_v11  ;;  %s294_s16 = scalar_lea.vmem %s244_s15, 16  ;;  %s298_s17 = scalar_lea.vmem %s244_s15, 32 }
   0x9   :  { %44 = vperm.xlu0 %292, %v30_v8   ;;  %p295_p0 = scmp.ne.s32.totalorder %s244_s15, %s294_s16  ;;  %p299_p1 = scmp.lt.s32.totalorder %s244_s15, %s244_s15 }
   0xa   :  { %275 = vmatmul.mubr.msk.f32.gmra.mxu0 %vm52_vm0, %v27_v9  ;;  %34 = vperm.xlu1 %293, %v28_v10   ;;  %p300_p2 = scmp.lt.s32.totalorder %s298_s17, %s294_s16 }
   0xc   :  { %p301_p3 = por %p300_p2, %p299_p1 }
   0xe   :  { %p302_p4 = pnand %p301_p3, %p295_p0 }
  0x80   :  { %v50_v13 = vpop.permute.xlu0 %49 }
  0x81   :  { %v40_v12 = vpop.permute.xlu1 %39 }
  0x84   :  { %v45_v20 = vpop.permute.xlu0 %44 }
  0x85   :  { %v35_v16 = vpop.permute.xlu1 %34 }
  0xc6   :  { %v273_v14 = vpop.f32.mrf.mxu0 }
  0xc7   :  { %v137_v18 = vadd.f32 %v273_v14, %v40_v12 }
  0xc8   :  { %v131_v15 = vpop.f32.mrf.mxu0 }
  0xc9   :  { %v132_v22 = vadd.f32 %v131_v15, %v35_v16  ;;  %v151_v25 = vmul.f32 0.2, %v137_v18 }
  0xca   :  { %v276_v17 = vpop.f32.mrf.mxu0 }
  0xcb   :  { %v147_v19 = vadd.f32 %v276_v17, %v50_v13  ;;  %v150_v28 = vmul.f32 0.2, %v132_v22  ;;  %v155_v30 = vmax.f32 %v137_v18, %v151_v25 }
  0xcc   :  { %v141_v21 = vpop.f32.mrf.mxu0 }
  0xcd   :  { %v153_v23 = vmul.f32 0.2, %v147_v19  ;;  %v142_v24 = vadd.f32 %v141_v21, %v45_v20  ;;  %v154_v31 = vmax.f32 %v132_v22, %v150_v28 }
  0xcf   :  { %v152_v26 = vmul.f32 0.2, %v142_v24  ;;  %v157_v27 = vmax.f32 %v147_v19, %v153_v23 }
  0xd1   :  { %v156_v29 = vmax.f32 %v142_v24, %v152_v26  ;;  %278 = vmatpush3.msra.mxu1 %v157_v27 }
  0xd2   :  { %279 = vmatprep.subr.mxu1 %v317_v11 }
  0xd3   :  { %280 = vmatpush3.msra.mxu1 %v156_v29 }
  0xd4   :  { %281 = vmatprep.subr.mxu1 %v317_v11 }
  0xd5   :  { %282 = vmatpush3.msra.mxu1 %v155_v30 }
  0xd6   :  { %283 = vmatprep.subr.mxu1 %v317_v11 }
  0xd7   :  { %284 = vmatpush3.msra.mxu1 %v154_v31 }
  0xd8   :  { %286 = vmatmul.mubr.msk.f32.vlgmr.msra.gmra.mxu1 %vm161_vm2, %v158_v32 }
 0x198   :  { %v231_v34 = vpop.f32.mrf.mxu1 }
 0x199   :  { %v232_v35 = vadd.f32 %v231_v34, %v160_v33 }
 0x19a   :  { %v287_v36 = vpop.f32.mrf.mxu1 }
 0x19b   :  { %236 = vst.msk [vmem:[#allocation3] sm:$0x1] %vm235_vm3, %v232_v35 }
 0x19c   :  { %305 = shalt.err (!%p302_p4)
}
 0x19d   :  { %246 = dma.vmem_to_hbm [thread:$0]  %s244_s15, 16, %s398_s5, [#allocation4]  }
 0x19e   :  { %314 = dma.done.wait [#allocation4], 16  }
 0x19f   :  { %315 = vsyncadd [#allocation4], 4294967280 }
 0x1a0   :  { %250 = vsyncpa [#allocation4], 1 }

</bundles_post_ra>
